<compile_context>
chip_gen: v7x
topology: tpu7x:2x2x1
jax: 0.10.0
libtpu: 0.0.40
codegen_flags: <defaults>
</compile_context>

<pallas_src>
import jax
import jax.numpy as jnp
from jax.experimental import pallas as pl
from jax.experimental.pallas import tpu as pltpu


def _round_up(x, m):
    return (x + m - 1) // m * m


# ---------------------------------------------------------------------------
# Kernel: once-per-sequence encoder-side attention projection  ctx @ W_c
# ---------------------------------------------------------------------------
def _ctx_proj_kernel(ctx_ref, wa_c_ref, o_ref):
    B, S, H2 = ctx_ref.shape
    A = wa_c_ref.shape[1]
    o_ref[...] = jnp.dot(
        ctx_ref[...].reshape(B * S, H2), wa_c_ref[...],
        preferred_element_type=jnp.float32).reshape(B, S, A)


# ---------------------------------------------------------------------------
# Kernel 1: attention (masked softmax) + single-step GRU cell
# ---------------------------------------------------------------------------
def _attn_gru_kernel(
    emb_ref,        # [B, E]     bf16
    hidden_ref,     # [B, D]     f32
    ctx_ref,        # [B, S, 2H] bf16
    cproj_ref,      # [B, S, A]  f32   (precomputed ctx @ W_c)
    mask_ref,       # [B, S]     int32
    wa_h_ref,       # [D, A]     bf16
    b_attn_ref,     # [1, A]     f32
    v_attn_ref,     # [1, A]     f32
    wih_e_ref,      # [3, E, D]  bf16  (gate order r, z, n)
    wih_a_ref,      # [3, 2H, D] bf16
    whh_ref,        # [3, D, D]  bf16
    b_ih_ref,       # [3, 1, D]  f32
    b_hh_ref,       # [3, 1, D]  f32
    # outputs
    hidden_out_ref,   # [B, D]   f32
    attnw_out_ref,    # [B, S]   f32
    attnapp_out_ref,  # [B, 2H]  f32
):
    B, S, A = cproj_ref.shape
    bf16 = jnp.bfloat16

    emb = emb_ref[...]                       # bf16 (dropout == identity at eval)
    h = hidden_ref[...]                      # f32
    h_bf = h.astype(bf16)
    ctx = ctx_ref[...]                       # bf16
    mask = mask_ref[...]

    # ------------- Bahdanau attention: v . tanh(Wh h + Wc ctx + b) ----------
    h_proj = jnp.dot(h_bf, wa_h_ref[...], preferred_element_type=jnp.float32)   # [B, A]
    energy = jnp.tanh(cproj_ref[...] + h_proj[:, None, :]
                      + b_attn_ref[...].reshape(1, 1, A))                        # [B, S, A]
    # N=1 "matmul" as a VPU multiply + lane reduction (keeps MXU/store path clean)
    scores = jnp.sum(energy * v_attn_ref[...].reshape(1, 1, A), axis=-1)         # [B, S]
    scores = jnp.where(mask == 0, jnp.float32(-1e10), scores)
    scores = scores - jnp.max(scores, axis=1, keepdims=True)
    exps = jnp.exp(scores)
    attn_w = exps / jnp.sum(exps, axis=1, keepdims=True)                         # [B, S]
    attnw_out_ref[...] = attn_w

    # attn_applied = bmm(attn_w.unsqueeze(1), context).squeeze(1)
    attn_applied = jnp.sum(attn_w[:, :, None] * ctx.astype(jnp.float32), axis=1)  # [B, 2H]
    attnapp_out_ref[...] = attn_applied
    a_bf = attn_applied.astype(bf16)

    # ------------- single-step GRU cell (PyTorch gate order r, z, n) --------
    # Per-gate matmuls against lane-aligned [., D] weights -- no lane slicing.
    def gates(i):
        gi = (jnp.dot(emb, wih_e_ref[i], preferred_element_type=jnp.float32)
              + jnp.dot(a_bf, wih_a_ref[i], preferred_element_type=jnp.float32)
              + b_ih_ref[i])
        gh = jnp.dot(h_bf, whh_ref[i], preferred_element_type=jnp.float32) + b_hh_ref[i]
        return gi, gh

    gi_r, gh_r = gates(0)
    gi_z, gh_z = gates(1)
    gi_n, gh_n = gates(2)
    r = jax.nn.sigmoid(gi_r + gh_r)
    z = jax.nn.sigmoid(gi_z + gh_z)
    n = jnp.tanh(gi_n + r * gh_n)
    h_new = (1.0 - z) * n + z * h                                                # [B, D]
    hidden_out_ref[...] = h_new


# ---------------------------------------------------------------------------
# Kernel 2: output projection, tiled over the (padded) vocab dimension
# ---------------------------------------------------------------------------
def _out_proj_kernel(x_ref, w_ref, b_ref, o_ref):
    # x: [B, K] bf16 ; w: [K, TILE_V] bf16 ; b: [1, TILE_V] f32 ; o: [B, TILE_V] f32
    o_ref[...] = (jnp.dot(x_ref[...], w_ref[...], preferred_element_type=jnp.float32)
                  + b_ref[...])


# ---------------------------------------------------------------------------
# One-time parameter preparation (transpose / split / cast / pad) -- hoisted
# out of the per-token decode step.
# ---------------------------------------------------------------------------
def make_params(key, vocab_size, emb_dim, enc_hid_dim, dec_hid_dim):
    """Deterministic synthetic parameters with PyTorch-native shapes."""
    H2 = 2 * enc_hid_dim
    A = dec_hid_dim  # attention hidden dim (standard choice)
    ks = jax.random.split(key, 10)
    s = 0.05
    return {
        "embedding": jax.random.normal(ks[0], (vocab_size, emb_dim), jnp.float32) * s,
        # attention.attn : Linear(D + 2H, A)   (forward cat order: [hidden, context])
        "w_attn": jax.random.normal(ks[1], (A, dec_hid_dim + H2), jnp.float32) * s,
        "b_attn": jax.random.normal(ks[2], (A,), jnp.float32) * s,
        # attention.v : Linear(A, 1, bias=False)
        "w_v": jax.random.normal(ks[3], (1, A), jnp.float32) * s,
        # gru : input = cat(embedded, attn_applied)  -> size E + 2H
        "w_ih": jax.random.normal(ks[4], (3 * dec_hid_dim, emb_dim + H2), jnp.float32) * s,
        "w_hh": jax.random.normal(ks[5], (3 * dec_hid_dim, dec_hid_dim), jnp.float32) * s,
        "b_ih": jax.random.normal(ks[6], (3 * dec_hid_dim,), jnp.float32) * s,
        "b_hh": jax.random.normal(ks[7], (3 * dec_hid_dim,), jnp.float32) * s,
        # out : Linear(D + 2H + E, V)  (forward cat order: [output, attn_applied, embedded])
        "w_out": jax.random.normal(ks[8], (vocab_size, dec_hid_dim + H2 + emb_dim), jnp.float32) * s,
        "b_out": jax.random.normal(ks[9], (vocab_size,), jnp.float32) * s,
    }


def prepare_params(params, emb_dim, enc_hid_dim, dec_hid_dim, tile_v=512):
    """Done ONCE per model: weight transpose/split, per-gate stacking, bf16
    cast, and vocab padding to a multiple of TILE_V (multiple of 128)."""
    E, H2, D = emb_dim, 2 * enc_hid_dim, dec_hid_dim
    A = dec_hid_dim
    V = params["w_out"].shape[0]
    bf16 = jnp.bfloat16

    wa = params["w_attn"]        # [A, D + 2H]
    wih_t = params["w_ih"].T     # [E + 2H, 3D]  (gate order r, z, n)
    whh_t = params["w_hh"].T     # [D, 3D]

    def split_gates(w_t):        # [in, 3D] -> [3, in, D]
        return jnp.stack([w_t[:, 0 * D:1 * D], w_t[:, 1 * D:2 * D], w_t[:, 2 * D:3 * D]], 0)

    def split_bias(b):           # [3D] -> [3, 1, D]
        return jnp.stack([b[0 * D:1 * D], b[1 * D:2 * D], b[2 * D:3 * D]], 0).reshape(3, 1, D)

    tile_v = min(tile_v, _round_up(V, 128))
    Vp = _round_up(V, tile_v)
    wout_p = jnp.pad(params["w_out"].T, ((0, 0), (0, Vp - V)))       # [D+2H+E, Vp]
    b_out_p = jnp.pad(params["b_out"], (0, Vp - V)).reshape(1, Vp)

    return {
        "V": V, "Vp": Vp, "tile_v": tile_v,
        "embedding": params["embedding"].astype(bf16),               # [Vemb, E]
        "wa_h": wa[:, :D].T.astype(bf16),                            # [D, A]
        "wa_c": wa[:, D:].T.astype(bf16),                            # [2H, A]
        "b_attn": params["b_attn"].reshape(1, A).astype(jnp.float32),
        "v_attn": params["w_v"].reshape(1, A).astype(jnp.float32),
        "wih_e": split_gates(wih_t[:E, :]).astype(bf16),             # [3, E, D]
        "wih_a": split_gates(wih_t[E:, :]).astype(bf16),             # [3, 2H, D]
        "whh": split_gates(whh_t).astype(bf16),                      # [3, D, D]
        "b_ih": split_bias(params["b_ih"]).astype(jnp.float32),      # [3, 1, D]
        "b_hh": split_bias(params["b_hh"]).astype(jnp.float32),      # [3, 1, D]
        "wout": wout_p.astype(bf16),                                 # [D+2H+E, Vp]
        "b_out": b_out_p.astype(jnp.float32),                        # [1, Vp]
    }


def precompute_context(context, prepped):
    """Once per *source sequence* (not per decoded token): bf16 encoder outputs
    and their attention projection ctx @ W_c -> [B, S, A]."""
    ctx_bf = context.astype(jnp.bfloat16)
    B, S, _ = context.shape
    A = prepped["wa_c"].shape[1]
    vmem = pl.BlockSpec(memory_space=pltpu.MemorySpace.VMEM)
    c_proj = pl.pallas_call(
        _ctx_proj_kernel,
        out_shape=jax.ShapeDtypeStruct((B, S, A), jnp.float32),
        in_specs=[vmem, vmem],
        out_specs=vmem,
    )(ctx_bf, prepped["wa_c"])
    return ctx_bf, c_proj


# ---------------------------------------------------------------------------
# Per-token decode step
# ---------------------------------------------------------------------------
def attn_decoder_step(inputs, hidden, ctx_bf, c_proj, mask, prepped):
    """Returns (logits [B,V] f32, new_hidden [B,D] f32, attn_weights [B,S] f32)."""
    B = inputs.shape[0]
    S, H2 = ctx_bf.shape[1], ctx_bf.shape[2]
    D = hidden.shape[1]
    V, Vp, tile_v = prepped["V"], prepped["Vp"], prepped["tile_v"]

    # embedding gather in plain JAX (glue); dropout == identity at eval
    emb = jnp.take(prepped["embedding"], inputs[:, 0], axis=0)        # [B, E] bf16

    # ---- kernel 1: attention + GRU (everything small, VMEM-resident) ------
    # NOTE: hidden_out (D) / attn_w (S) last dims may be <128 at toy sizes ->
    # masked stores; negligible next to the vocab projection stream.
    vmem = pl.BlockSpec(memory_space=pltpu.MemorySpace.VMEM)
    args1 = (emb, hidden, ctx_bf, c_proj, mask.astype(jnp.int32),
             prepped["wa_h"], prepped["b_attn"], prepped["v_attn"],
             prepped["wih_e"], prepped["wih_a"], prepped["whh"],
             prepped["b_ih"], prepped["b_hh"])
    h_new, attn_w, attn_applied = pl.pallas_call(
        _attn_gru_kernel,
        out_shape=(
            jax.ShapeDtypeStruct((B, D), jnp.float32),
            jax.ShapeDtypeStruct((B, S), jnp.float32),
            jax.ShapeDtypeStruct((B, H2), jnp.float32),
        ),
        in_specs=[vmem] * len(args1),
        out_specs=(vmem, vmem, vmem),
    )(*args1)

    # ---- kernel 2: output projection, streamed over padded vocab ----------
    # cat order [output, attn_applied, embedded] matches w_out column order.
    x = jnp.concatenate(
        [h_new.astype(jnp.bfloat16), attn_applied.astype(jnp.bfloat16), emb], axis=1)  # [B, K] bf16
    K = x.shape[1]
    n_tiles = Vp // tile_v

    # double-buffered footprint of streamed tiles (+ headroom)
    tile_bytes = 2 * (K * tile_v * 2 + tile_v * 4 + B * tile_v * 4 + B * K * 2)
    vmem_limit = min(int(tile_bytes * 3) + (8 << 20), 96 << 20)

    logits_p = pl.pallas_call(
        _out_proj_kernel,
        out_shape=jax.ShapeDtypeStruct((B, Vp), jnp.float32),
        grid=(n_tiles,),
        in_specs=[
            pl.BlockSpec((B, K), lambda j: (0, 0)),         # activations: resident
            pl.BlockSpec((K, tile_v), lambda j: (0, j)),    # bf16 weight tile stream
            pl.BlockSpec((1, tile_v), lambda j: (0, j)),    # bias tile
        ],
        out_specs=pl.BlockSpec((B, tile_v), lambda j: (0, j)),
        compiler_params=pltpu.CompilerParams(
            dimension_semantics=("parallel",),              # shard V across TCs (v7x)
            vmem_limit_bytes=vmem_limit),
    )(x, prepped["wout"], prepped["b_out"])

    return logits_p[:, :V], h_new, attn_w


# ---------------------------------------------------------------------------
# Pure-JAX reference (eval mode), using the same bf16 weight/ctx storage as
# the kernel so the comparison isolates kernel correctness.
# ---------------------------------------------------------------------------
def reference_forward(inputs, hidden, context, mask, params):
    def _q(x):  # bf16 round-trip (what the kernel stores)
        return x.astype(jnp.bfloat16).astype(jnp.float32)

    B, S, H2 = context.shape
    D = hidden.shape[1]
    ctx = _q(context)
    embedded = jnp.take(_q(params["embedding"]), inputs[:, 0], axis=0)
    # attention
    h_rep = jnp.broadcast_to(hidden[:, None, :], (B, S, D))
    cat = jnp.concatenate([h_rep, ctx], axis=2)
    energy = jnp.tanh(cat @ _q(params["w_attn"]).T + params["b_attn"])
    scores = (energy @ params["w_v"].T)[..., 0]
    scores = jnp.where(mask == 0, -1e10, scores)
    attn_w = jax.nn.softmax(scores, axis=1)
    attn_applied = jnp.einsum("bs,bsh->bh", attn_w, ctx)
    # GRU cell
    x = jnp.concatenate([embedded, attn_applied], axis=1)
    gi = x @ _q(params["w_ih"]).T + params["b_ih"]
    gh = hidden @ _q(params["w_hh"]).T + params["b_hh"]
    r = jax.nn.sigmoid(gi[:, :D] + gh[:, :D])
    z = jax.nn.sigmoid(gi[:, D:2 * D] + gh[:, D:2 * D])
    n = jnp.tanh(gi[:, 2 * D:] + r * gh[:, 2 * D:])
    h_new = (1.0 - z) * n + z * hidden
    out = (jnp.concatenate([h_new, attn_applied, embedded], axis=1)
           @ _q(params["w_out"]).T + params["b_out"])
    return out, h_new, attn_w


if __name__ == "__main__":
    # small shapes consistent with the module (B kept small for the demo; the
    # kernel is weight-bandwidth-bound, so larger B is nearly free).
    B, S = 2, 8
    vocab_size, emb_dim = 64, 32
    enc_hid_dim, dec_hid_dim = 32, 32

    key = jax.random.PRNGKey(0)
    kp, ki, kh, kc = jax.random.split(key, 4)

    params = make_params(kp, vocab_size, emb_dim, enc_hid_dim, dec_hid_dim)

    inputs = jax.random.randint(ki, (B, 1), 0, vocab_size, dtype=jnp.int32)   # [B, 1]
    hidden = jax.random.normal(kh, (B, dec_hid_dim), jnp.float32)             # [B, D]
    context = jax.random.normal(kc, (B, S, 2 * enc_hid_dim), jnp.float32)     # [B, S, 2H]
    mask = jnp.ones((B, S), jnp.int32).at[1, 6:].set(0)                        # [B, S]

    # one-time / per-sequence preprocessing (hoisted out of the decode step)
    prepped = prepare_params(params, emb_dim, enc_hid_dim, dec_hid_dim)
    ctx_bf, c_proj = precompute_context(context, prepped)

    out, h_new, attn_w = attn_decoder_step(inputs, hidden, ctx_bf, c_proj, mask, prepped)
    jax.block_until_ready((out, h_new, attn_w))

    # correctness check against pure-JAX reference (bf16 weight storage)
    ro, rh, rw = reference_forward(inputs, hidden, context, mask, params)
    assert out.shape == (B, vocab_size) and h_new.shape == (B, dec_hid_dim)
    assert jnp.allclose(attn_w, rw, atol=5e-3), "attn weights mismatch"
    assert jnp.allclose(h_new, rh, atol=2e-2, rtol=2e-2), "hidden mismatch"
    assert jnp.allclose(out, ro, atol=3e-2, rtol=3e-2), "logits mismatch"

    print("KERNEL_OK")
</pallas_src>

<mosaic_0001>
module attributes {stable_mosaic.version = 11 : i64} {
  func.func @_ctx_proj_kernel(%arg0: memref<2x8x64xbf16, #tpu.memory_space<vmem>>, %arg1: memref<64x32xbf16, #tpu.memory_space<vmem>>, %arg2: memref<2x8x32xf32, #tpu.memory_space<vmem>>) attributes {dimension_semantics = [], scalar_prefetch = 0 : i64, scratch_operands = 0 : i64, tpu.core_type = #tpu.core_type<tc>} {
    %c0 = arith.constant 0 : index
    %c0_0 = arith.constant 0 : index
    %c0_1 = arith.constant 0 : index
    %0 = vector.load %arg0[%c0, %c0_0, %c0_1] : memref<2x8x64xbf16, #tpu.memory_space<vmem>>, vector<2x8x64xbf16>
    %1 = vector.shape_cast %0 : vector<2x8x64xbf16> to vector<16x64xbf16>
    %c0_2 = arith.constant 0 : index
    %c0_3 = arith.constant 0 : index
    %2 = vector.load %arg1[%c0_2, %c0_3] : memref<64x32xbf16, #tpu.memory_space<vmem>>, vector<64x32xbf16>
    %cst = arith.constant dense<0.000000e+00> : vector<16x32xf32>
    %3 = tpu.matmul %1, %2, %cst {dimension_numbers = #tpu.dot_dimension_numbers<[1], [0], [0], [1], [0, 0, 1, 1], [], []>} : vector<16x64xbf16>, vector<64x32xbf16>, vector<16x32xf32> -> vector<16x32xf32>
    %4 = vector.shape_cast %3 : vector<16x32xf32> to vector<2x8x32xf32>
    %c0_4 = arith.constant 0 : index
    %c0_5 = arith.constant 0 : index
    %c0_6 = arith.constant 0 : index
    %5 = vector.load %arg2[%c0_4, %c0_5, %c0_6] : memref<2x8x32xf32, #tpu.memory_space<vmem>>, vector<2x8x32xf32>
    tpu.vector_store %arg2[%c0_4, %c0_5, %c0_6], %4 {strides = array<i32>} : memref<2x8x32xf32, #tpu.memory_space<vmem>>, vector<2x8x32xf32>,
    return
  }
}

</mosaic_0001>

<bundles_post_ra>
// kernel: tpu_custom_call.1
= control target key start
LH: loop header
LB: loop body
LE: loop exit
PB: predicated region body
PF: predicated region fallthrough
CT: control target
= control target key end

     0   :  { %v173_v1 = vmov 0.0   ;;  %vm174_vm0 = vmmov 0   ;;  %s220_s0 = inlined_call_operand.vmem [shape: bf16[2,8,64], index: 0, kind: input, shape index: {}]   ;;  %s221_s1 = inlined_call_operand.vmem [shape: bf16[64,32], index: 1, kind: input, shape index: {}]   ;;  %s222_s2 = inlined_call_operand.hbm [shape: f32[2,8,32], index: 2, kind: output, shape index: {}]  }
   0x1   :  { %v144_v0 = vld [vmem:[%s221_s1] sm:$0xff]   ;;  %127 = vmatprep.subr.bf16.mxu0 %v173_v1  ;;  %v145_v2 = vld [vmem:[%s221_s1 + $0x8] sm:$0xff]   ;;  %135 = vmatprep.mubr.msk.bf16.mxu0 %vm174_vm0, %v173_v1 }
   0x2   :  { %128 = vmatpush3.bf16.msra.mxu0 %v144_v0 }
   0x3   :  { %129 = vmatprep.subr.bf16.mxu0 %v173_v1 }
   0x4   :  { %7 = vsyncpa [#allocation3], 0  ;;  %v146_v3 = vld [vmem:[%s221_s1 + $0x10] sm:$0xff]   ;;  %v147_v4 = vld [vmem:[%s221_s1 + $0x18] sm:$0xff]   ;;  %vm52_vm1 = vcmask 523264   ;;  %s175_s19 = smov [#allocation2]  }
   0x5   :  { %v148_v5 = vld [vmem:[%s220_s0] sm:$0xff]   ;;  %s105_s20 = sshll.u32 %s175_s19, 4  ;;  %vm97_vm2 = vcmask 261120   ;;  %s106_s20 = int_to_ptr.vmem [resolvable:$true] %s105_s20 }
   0x6   :  { %130 = vmatpush3.bf16.msra.mxu0 %v145_v2  ;;  %s149_s21 = scalar_lea.vmem %s106_s20, 256  ;;  %p154_p1 = scmp.lt.s32.totalorder %s106_s20, %s106_s20 }
   0x7   :  { %131 = vmatprep.subr.bf16.mxu0 %v173_v1  ;;  %p150_p0 = scmp.ne.s32.totalorder %s106_s20, %s149_s21  ;;  %p155_p2 = scmp.lt.s32.totalorder %s149_s21, %s149_s21 }
   0x9   :  { %p156_p3 = por %p155_p2, %p154_p1 }
   0xa   :  { %132 = vmatpush3.bf16.msra.mxu0 %v146_v3 }
   0xb   :  { %133 = vmatprep.subr.bf16.mxu0 %v173_v1  ;;  %p157_p4 = pnand %p156_p3, %p150_p0 }
   0xe   :  { %134 = vmatpush3.bf16.msra.mxu0 %v147_v4 }
  0x11   :  { %136 = vmatmul.mubr.msk.bf16.vlgmr.msra.gmra.mrb[0].mxu0 %vm52_vm1, %v148_v5 }
  0xe4   :  { %v90_v6 = vpop.f32.mrb[0].mxu0 }
  0xe5   :  { %98 = vst.msk [vmem:[#allocation2] sm:$0xff] %vm97_vm2, %v90_v6  ;;  %v137_v7 = vpop.f32.mrb[1].mxu0 }
  0xe6   :  { %v93_v8 = vpop.f32.mrb[2].mxu0 }
  0xe7   :  { %99 = vst.msk [vmem:[#allocation2 + $0x8] sm:$0xff] %vm97_vm2, %v93_v8  ;;  %v138_v9 = vpop.f32.mrb[3].mxu0 }
  0xe8   :  { %160 = shalt.err (!%p157_p4)
}
  0xe9   :  { %s161_s22 = scalar_lea.hbm %s222_s2, 256 }
  0xea   :  { %p162_p5 = scmp.ne.s32.totalorder %s222_s2, %s161_s22  ;;  %p165_p6 = scmp.lt.u32.totalorder %s161_s22, %s222_s2 }
  0xec   :  { %p167_p7 = pnand %p165_p6, %p162_p5 }
  0xee   :  { %170 = shalt.err (!%p167_p7)
}
  0xef   :  { %s176_s27 = smov 128   ;;  %s177_s28 = smov 8  }
  0xf0   :  { %111 = dma.vmem_to_hbm [thread:$0]  %s106_s20, 256, %s222_s2, [#allocation3], %s176_s27, %s176_s27, %s177_s28  }
  0xf1   :  { %171 = dma.done.wait [#allocation3], 256  }
  0xf2   :  { %172 = vsyncadd [#allocation3], 4294967040 }
  0xf3   :  { %115 = vsyncpa [#allocation3], 1 }

</bundles_post_ra>
